<compile_context>
chip_gen: v5e
topology: v5e:2x2
jax: 0.10.0
libtpu: 0.0.40
codegen_flags: <defaults>
</compile_context>

<pallas_src>
import functools

import jax
import jax.numpy as jnp
import numpy as np
from jax import lax
from jax.experimental import pallas as pl
from jax.experimental.pallas import tpu as pltpu

LN_EPS = 1e-5            # PyTorch nn.LayerNorm default (biased variance)
OUT_ROWS = 8             # packed output channels (action_dim + 1 <= 8), sublane-aligned
MAX_TB = 2048            # max batch tile: big enough to amortize per-step overhead,
                         # small enough that f32 intermediates stay well under VMEM limits
SINGLE_TILE_MAX = 1024   # below this batch size use a single grid step


def _round_up(x, m):
    return (x + m - 1) // m * m


def _dual_layernorm(y, gamma, beta, h):
    """LayerNorm over each half of the lane dimension independently.

    y: (TB, 2h); lanes [0:h] are the actor head, lanes [h:2h] the critic head.
    Uses an iota lane mask + full-width reductions, so there is no sub-vreg
    slice or concatenate (per perf review). Biased variance, eps=1e-5,
    matching PyTorch nn.LayerNorm.
    """
    hi = lax.broadcasted_iota(jnp.int32, y.shape, 1) >= h
    inv_h = 1.0 / h
    sum_lo = jnp.sum(jnp.where(hi, 0.0, y), axis=-1, keepdims=True)
    sum_hi = jnp.sum(jnp.where(hi, y, 0.0), axis=-1, keepdims=True)
    mu = jnp.where(hi, sum_hi, sum_lo) * inv_h
    d = y - mu
    dsq = d * d
    var_lo = jnp.sum(jnp.where(hi, 0.0, dsq), axis=-1, keepdims=True)
    var_hi = jnp.sum(jnp.where(hi, dsq, 0.0), axis=-1, keepdims=True)
    var = jnp.where(hi, var_hi, var_lo) * inv_h
    return d * lax.rsqrt(var + LN_EPS) * gamma + beta


def policy_kernel(x_ref, w1_ref, w2_ref, w3t_ref, vec_ref, b3_ref, out_ref, *, h1, h2):
    """Fused actor+critic MLP: (Linear -> ReLU -> LayerNorm) x2 -> Linear.

    vec_ref rows (f32, width 2*h1): 0=b1 1=g1 2=be1 | 3=b2 4=g2 5=be2 (width 2*h2).
    Output written transposed: out_ref is (8, TB), rows 0..3 action mean,
    row 4 value, rows 5..7 zero.
    """
    cdt = w1_ref.dtype                      # bf16 (perf) or f32 (exact) matmul inputs
    x = x_ref[...].astype(cdt)
    vec = vec_ref[...]

    b1, g1, be1 = vec[0:1, :], vec[1:2, :], vec[2:3, :]
    b2 = vec[3:4, :2 * h2]
    g2 = vec[4:5, :2 * h2]
    be2 = vec[5:6, :2 * h2]

    # Layer 1 (both heads): one (TB, S) @ (S, 2*h1) MXU pass, N = 256.
    y = jnp.dot(x, w1_ref[...], preferred_element_type=jnp.float32) + b1
    y = jnp.maximum(y, 0.0)
    y = _dual_layernorm(y, g1, be1, h1)

    # Layer 2 (both heads): block-diagonal (2*h1, 2*h2) weight, single N=128 pass.
    y = jnp.dot(y.astype(cdt), w2_ref[...], preferred_element_type=jnp.float32) + b2
    y = jnp.maximum(y, 0.0)
    y = _dual_layernorm(y, g2, be2, h2)

    # Output heads, computed directly in transposed (8, TB) orientation:
    # out_t = w3t (8, 2*h2) contracted with y (TB, 2*h2) over the feature dim
    # (the q @ k.T MXU pattern) -> lane-dense stores, batch in the lane dim.
    out_t = lax.dot_general(
        w3t_ref[...], y.astype(cdt),
        dimension_numbers=(((1,), (1,)), ((), ())),
        preferred_element_type=jnp.float32)
    out_ref[...] = (out_t + b3_ref[...]).astype(out_ref.dtype)


def init_head_params(key, in_dim, hidden_dims, out_dim):
    """Per-head params matching the module: orthogonal weights (stored (in,out)
    so y = x @ W + b), zero biases, LayerNorm gamma=1 / beta=0."""
    ortho = jax.nn.initializers.orthogonal()
    k1, k2, k3 = jax.random.split(key, 3)
    h1, h2 = hidden_dims
    return {
        "w1": ortho(k1, (in_dim, h1), jnp.float32),
        "b1": jnp.zeros((h1,), jnp.float32),
        "g1": jnp.ones((h1,), jnp.float32),
        "be1": jnp.zeros((h1,), jnp.float32),
        "w2": ortho(k2, (h1, h2), jnp.float32),
        "b2": jnp.zeros((h2,), jnp.float32),
        "g2": jnp.ones((h2,), jnp.float32),
        "be2": jnp.zeros((h2,), jnp.float32),
        "w3": ortho(k3, (h2, out_dim), jnp.float32),
        "b3": jnp.zeros((out_dim,), jnp.float32),
    }


def pack_policy_params(actor, critic, state_dim, hidden_dims, action_dim,
                       param_dtype=jnp.bfloat16):
    """Pack actor+critic params into the fused-kernel layout."""
    h1, h2 = hidden_dims
    assert action_dim + 1 <= OUT_ROWS
    assert (2 * h1) % 128 == 0 and (2 * h2) % 128 == 0 and h2 <= h1

    # Layer 1: concat along N -> (S, 2*h1).
    w1 = jnp.concatenate([actor["w1"], critic["w1"]], axis=1)
    # Layer 2: block-diagonal -> (2*h1, 2*h2).
    w2 = jnp.zeros((2 * h1, 2 * h2), jnp.float32)
    w2 = w2.at[:h1, :h2].set(actor["w2"]).at[h1:, h2:].set(critic["w2"])
    # Output projection stored transposed & padded to 8 rows so the kernel can
    # emit the (8, TB) lane-dense output slab directly. Padded rows are zero.
    w3t = jnp.zeros((OUT_ROWS, 2 * h2), jnp.float32)
    w3t = w3t.at[:action_dim, :h2].set(actor["w3"].T)
    w3t = w3t.at[action_dim, h2:].set(critic["w3"][:, 0])
    # Output bias as an (8, 1) column (broadcasts along the batch/lane dim).
    b3 = jnp.zeros((OUT_ROWS, 1), jnp.float32)
    b3 = b3.at[:action_dim, 0].set(actor["b3"]).at[action_dim, 0].set(critic["b3"][0])

    # Single packed (8, 2*h1) f32 vector slab (one VMEM tile / DMA descriptor).
    def cat(a, c):
        return jnp.concatenate([a, c], axis=0)

    vec = jnp.zeros((8, 2 * h1), jnp.float32)
    vec = vec.at[0, :2 * h1].set(cat(actor["b1"], critic["b1"]))
    vec = vec.at[1, :2 * h1].set(cat(actor["g1"], critic["g1"]))
    vec = vec.at[2, :2 * h1].set(cat(actor["be1"], critic["be1"]))
    vec = vec.at[3, :2 * h2].set(cat(actor["b2"], critic["b2"]))
    vec = vec.at[4, :2 * h2].set(cat(actor["g2"], critic["g2"]))
    vec = vec.at[5, :2 * h2].set(cat(actor["be2"], critic["be2"]))

    return {"w1": w1.astype(param_dtype), "w2": w2.astype(param_dtype),
            "w3t": w3t.astype(param_dtype), "vec": vec, "b3": b3,
            "h1": h1, "h2": h2, "state_dim": state_dim, "action_dim": action_dim}


def run_policy_packed(state, packed):
    """One pallas_call computing both heads; returns the transposed (8, B) slab."""
    h1, h2 = packed["h1"], packed["h2"]
    B, S = state.shape

    # Tile selection (perf review): one step for small B; for larger B use
    # ~B/2 tiles (>=2 grid steps so the "parallel" axis shards across v7x's two
    # TensorCores), capped at MAX_TB. Tiles are multiples of 128 so the
    # transposed output block stays lane-aligned; no host-side padding -- the
    # ragged last block is handled (masked writes) by Pallas.
    if B <= SINGLE_TILE_MAX:
        TB = B
    else:
        TB = min(MAX_TB, _round_up(pl.cdiv(B, 2), 128))
    grid = (pl.cdiv(B, TB),)

    kernel = functools.partial(policy_kernel, h1=h1, h2=h2)

    flops = 2 * B * (S * 2 * h1 + (2 * h1) * (2 * h2) + (2 * h2) * OUT_ROWS)
    bytes_accessed = (
        B * S * state.dtype.itemsize
        + packed["w1"].size * packed["w1"].dtype.itemsize
        + packed["w2"].size * packed["w2"].dtype.itemsize
        + packed["w3t"].size * packed["w3t"].dtype.itemsize
        + packed["vec"].size * 4 + packed["b3"].size * 4
        + OUT_ROWS * B * 4)

    cp_kwargs = dict(dimension_semantics=("parallel",))
    if TB >= 1024:
        # Large tiles: raise the scoped-VMEM limit (v5e default is 16 MiB);
        # still comfortably under v7x's 64 MiB physical VMEM.
        cp_kwargs["vmem_limit_bytes"] = 48 * 1024 * 1024

    out = pl.pallas_call(
        kernel,
        out_shape=jax.ShapeDtypeStruct((OUT_ROWS, B), jnp.float32),
        grid=grid,
        in_specs=[
            pl.BlockSpec((TB, S), lambda i: (i, 0)),            # state tiles
            pl.BlockSpec((S, 2 * h1), lambda i: (0, 0)),        # weights stay
            pl.BlockSpec((2 * h1, 2 * h2), lambda i: (0, 0)),   # VMEM-resident
            pl.BlockSpec((OUT_ROWS, 2 * h2), lambda i: (0, 0)),
            pl.BlockSpec((8, 2 * h1), lambda i: (0, 0)),        # packed vectors
            pl.BlockSpec((OUT_ROWS, 1), lambda i: (0, 0)),      # output bias col
        ],
        out_specs=pl.BlockSpec((OUT_ROWS, TB), lambda i: (0, i)),
        compiler_params=pltpu.CompilerParams(**cp_kwargs),
        cost_estimate=pl.CostEstimate(
            flops=flops, transcendentals=4 * B, bytes_accessed=bytes_accessed),
    )(state, packed["w1"], packed["w2"], packed["w3t"], packed["vec"], packed["b3"])
    return out                                                  # (8, B)


def biosphere_policy_forward(state, packed, action_log_std):
    """Equivalent of BiospherePolicy.forward: the Normal distribution is
    represented by (mean, std); value is the critic output."""
    slab = run_policy_packed(state, packed)                     # (8, B)
    a = packed["action_dim"]
    action_mean = slab[:a, :].T                                 # (B, action_dim)
    value = slab[a:a + 1, :].T                                  # (B, 1)
    action_std = jnp.exp(action_log_std)                        # tiny glue op
    return action_mean, action_std, value


def reference_head(state, p):
    """Plain-JAX (fp32, highest precision) reference for one MLP head."""
    hp = lax.Precision.HIGHEST

    def ln(h, g, b):
        mu = jnp.mean(h, axis=-1, keepdims=True)
        var = jnp.mean((h - mu) ** 2, axis=-1, keepdims=True)
        return (h - mu) * lax.rsqrt(var + LN_EPS) * g + b

    h = jnp.maximum(jnp.dot(state, p["w1"], precision=hp) + p["b1"][None, :], 0.0)
    h = ln(h, p["g1"][None, :], p["be1"][None, :])
    h = jnp.maximum(jnp.dot(h, p["w2"], precision=hp) + p["b2"][None, :], 0.0)
    h = ln(h, p["g2"][None, :], p["be2"][None, :])
    return jnp.dot(h, p["w3"], precision=hp) + p["b3"][None, :]


if __name__ == "__main__":
    batch = 8
    state_dim = 32
    action_dim = 4
    hidden_dims = [128, 64]
    std_init = 0.5

    key = jax.random.PRNGKey(0)
    k_state, k_big, k_actor, k_critic, k_pert = jax.random.split(key, 5)

    state = jax.random.normal(k_state, (batch, state_dim), dtype=jnp.float32)

    actor_params = init_head_params(k_actor, state_dim, hidden_dims, action_dim)
    critic_params = init_head_params(k_critic, state_dim, hidden_dims, 1)

    # Exercise non-trivial bias / LayerNorm params (as after training) so the
    # packed-vector path is fully validated.
    pk = list(jax.random.split(k_pert, 14))
    for params in (actor_params, critic_params):
        for name in ("b1", "be1", "b2", "be2", "b3"):
            params[name] = 0.1 * jax.random.normal(pk.pop(), params[name].shape,
                                                   jnp.float32)
        for name in ("g1", "g2"):
            params[name] = 1.0 + 0.1 * jax.random.normal(pk.pop(),
                                                         params[name].shape,
                                                         jnp.float32)

    action_log_std = jnp.full((1, action_dim), np.log(std_init), jnp.float32)
    ref_mean = reference_head(state, actor_params)
    ref_value = reference_head(state, critic_params)

    # ---- fp32 parameter mode: exact parity with the PyTorch fp32 module ----
    packed_f32 = pack_policy_params(actor_params, critic_params, state_dim,
                                    hidden_dims, action_dim, jnp.float32)
    mean32, std32, val32 = biosphere_policy_forward(state, packed_f32, action_log_std)
    jax.block_until_ready((mean32, std32, val32))
    np.testing.assert_allclose(np.asarray(mean32), np.asarray(ref_mean),
                               rtol=2e-3, atol=2e-3)
    np.testing.assert_allclose(np.asarray(val32), np.asarray(ref_value),
                               rtol=2e-3, atol=2e-3)
    np.testing.assert_allclose(np.asarray(std32),
                               np.full((1, action_dim), std_init, np.float32),
                               rtol=1e-6, atol=1e-6)
    assert mean32.shape == (batch, action_dim)
    assert std32.shape == (1, action_dim)
    assert val32.shape == (batch, 1)

    # ---- bf16 parameter mode (default perf path; looser tolerance) ----
    packed_bf16 = pack_policy_params(actor_params, critic_params, state_dim,
                                     hidden_dims, action_dim, jnp.bfloat16)
    mean16, _, val16 = biosphere_policy_forward(state, packed_bf16, action_log_std)
    jax.block_until_ready((mean16, val16))
    np.testing.assert_allclose(np.asarray(mean16), np.asarray(ref_mean),
                               rtol=5e-2, atol=5e-2)
    np.testing.assert_allclose(np.asarray(val16), np.asarray(ref_value),
                               rtol=5e-2, atol=5e-2)

    # ---- multi-tile + ragged-edge path (B > 1024, not a multiple of the tile) ----
    big_B = 1300
    big_state = jax.random.normal(k_big, (big_B, state_dim), dtype=jnp.float32)
    mean_big, _, val_big = biosphere_policy_forward(big_state, packed_bf16,
                                                    action_log_std)
    jax.block_until_ready((mean_big, val_big))
    np.testing.assert_allclose(np.asarray(mean_big),
                               np.asarray(reference_head(big_state, actor_params)),
                               rtol=5e-2, atol=5e-2)
    np.testing.assert_allclose(np.asarray(val_big),
                               np.asarray(reference_head(big_state, critic_params)),
                               rtol=5e-2, atol=5e-2)
    assert mean_big.shape == (big_B, action_dim) and val_big.shape == (big_B, 1)

    print("KERNEL_OK")
</pallas_src>

<mosaic_0001>
module attributes {stable_mosaic.version = 11 : i64} {
  func.func @policy_kernel(%arg0: i32, %arg1: memref<8x32xf32, #tpu.memory_space<vmem>>, %arg2: memref<32x256xf32, #tpu.memory_space<vmem>>, %arg3: memref<256x128xf32, #tpu.memory_space<vmem>>, %arg4: memref<8x128xf32, #tpu.memory_space<vmem>>, %arg5: memref<8x256xf32, #tpu.memory_space<vmem>>, %arg6: memref<8x1xf32, #tpu.memory_space<vmem>>, %arg7: memref<8x8xf32, #tpu.memory_space<vmem>>) attributes {dimension_semantics = [#tpu.dimension_semantics<parallel>], iteration_bounds = array<i64: 1>, scalar_prefetch = 0 : i64, scratch_operands = 0 : i64, tpu.core_type = #tpu.core_type<tc>, window_params = [{transform_indices = @transform_0, window_bounds = array<i64: 8, 32>}, {pipeline_mode = #tpu.pipeline_mode<synchronous>, transform_indices = @transform_1, window_bounds = array<i64: 32, 256>}, {pipeline_mode = #tpu.pipeline_mode<synchronous>, transform_indices = @transform_2, window_bounds = array<i64: 256, 128>}, {pipeline_mode = #tpu.pipeline_mode<synchronous>, transform_indices = @transform_3, window_bounds = array<i64: 8, 128>}, {pipeline_mode = #tpu.pipeline_mode<synchronous>, transform_indices = @transform_4, window_bounds = array<i64: 8, 256>}, {pipeline_mode = #tpu.pipeline_mode<synchronous>, transform_indices = @transform_5, window_bounds = array<i64: 8, 1>}, {transform_indices = @transform_6, window_bounds = array<i64: 8, 8>}]} {
    %c0 = arith.constant 0 : index
    %c0_0 = arith.constant 0 : index
    %0 = vector.load %arg1[%c0, %c0_0] : memref<8x32xf32, #tpu.memory_space<vmem>>, vector<8x32xf32>
    %c0_1 = arith.constant 0 : index
    %c0_2 = arith.constant 0 : index
    %1 = vector.load %arg5[%c0_1, %c0_2] : memref<8x256xf32, #tpu.memory_space<vmem>>, vector<8x256xf32>
    %2 = vector.extract_strided_slice %1 {offsets = [0, 0], sizes = [1, 256], strides = [1, 1]} : vector<8x256xf32> to vector<1x256xf32>
    %3 = vector.extract_strided_slice %1 {offsets = [1, 0], sizes = [1, 256], strides = [1, 1]} : vector<8x256xf32> to vector<1x256xf32>
    %4 = vector.extract_strided_slice %1 {offsets = [2, 0], sizes = [1, 256], strides = [1, 1]} : vector<8x256xf32> to vector<1x256xf32>
    %5 = vector.extract_strided_slice %1 {offsets = [3, 0], sizes = [1, 128], strides = [1, 1]} : vector<8x256xf32> to vector<1x128xf32>
    %6 = vector.extract_strided_slice %1 {offsets = [4, 0], sizes = [1, 128], strides = [1, 1]} : vector<8x256xf32> to vector<1x128xf32>
    %7 = vector.extract_strided_slice %1 {offsets = [5, 0], sizes = [1, 128], strides = [1, 1]} : vector<8x256xf32> to vector<1x128xf32>
    %c0_3 = arith.constant 0 : index
    %c0_4 = arith.constant 0 : index
    %8 = vector.load %arg2[%c0_3, %c0_4] : memref<32x256xf32, #tpu.memory_space<vmem>>, vector<32x256xf32>
    %cst = arith.constant dense<0.000000e+00> : vector<8x256xf32>
    %9 = tpu.matmul %0, %8, %cst {dimension_numbers = #tpu.dot_dimension_numbers<[1], [0], [0], [1], [0, 0, 1, 1], [], []>} : vector<8x32xf32>, vector<32x256xf32>, vector<8x256xf32> -> vector<8x256xf32>
    %10 = vector.broadcast %2 : vector<1x256xf32> to vector<8x256xf32>
    %11 = arith.addf %9, %10 : vector<8x256xf32>
    %cst_5 = arith.constant 0.000000e+00 : f32
    %12 = vector.broadcast %cst_5 : f32 to vector<8x256xf32>
    %13 = arith.maximumf %11, %12 : vector<8x256xf32>
    %14 = tpu.iota {dimensions = array<i32: 1>} : vector<8x256xi32>
    %c128_i32 = arith.constant 128 : i32
    %15 = vector.broadcast %c128_i32 : i32 to vector<8x256xi32>
    %16 = arith.cmpi sge, %14, %15 : vector<8x256xi32>
    %cst_6 = arith.constant 0.000000e+00 : f32
    %17 = vector.broadcast %cst_6 : f32 to vector<8x256xf32>
    %18 = arith.select %16, %17, %13 : vector<8x256xi1>, vector<8x256xf32>
    %cst_7 = arith.constant dense<0.000000e+00> : vector<8xf32>
    %19 = vector.multi_reduction <add>, %18, %cst_7 [1] : vector<8x256xf32> to vector<8xf32>
    %20 = vector.shape_cast %19 : vector<8xf32> to vector<8x1xf32>
    %cst_8 = arith.constant 0.000000e+00 : f32
    %21 = vector.broadcast %cst_8 : f32 to vector<8x256xf32>
    %22 = arith.select %16, %13, %21 : vector<8x256xi1>, vector<8x256xf32>
    %cst_9 = arith.constant dense<0.000000e+00> : vector<8xf32>
    %23 = vector.multi_reduction <add>, %22, %cst_9 [1] : vector<8x256xf32> to vector<8xf32>
    %24 = vector.shape_cast %23 : vector<8xf32> to vector<8x1xf32>
    %25 = vector.shape_cast %24 : vector<8x1xf32> to vector<8x1xf32>
    %26 = vector.broadcast %25 : vector<8x1xf32> to vector<8x256xf32>
    %27 = vector.shape_cast %20 : vector<8x1xf32> to vector<8x1xf32>
    %28 = vector.broadcast %27 : vector<8x1xf32> to vector<8x256xf32>
    %29 = arith.select %16, %26, %28 : vector<8x256xi1>, vector<8x256xf32>
    %cst_10 = arith.constant 7.812500e-03 : f32
    %30 = vector.broadcast %cst_10 : f32 to vector<8x256xf32>
    %31 = arith.mulf %29, %30 : vector<8x256xf32>
    %32 = arith.subf %13, %31 : vector<8x256xf32>
    %33 = arith.mulf %32, %32 : vector<8x256xf32>
    %cst_11 = arith.constant 0.000000e+00 : f32
    %34 = vector.broadcast %cst_11 : f32 to vector<8x256xf32>
    %35 = arith.select %16, %34, %33 : vector<8x256xi1>, vector<8x256xf32>
    %cst_12 = arith.constant dense<0.000000e+00> : vector<8xf32>
    %36 = vector.multi_reduction <add>, %35, %cst_12 [1] : vector<8x256xf32> to vector<8xf32>
    %37 = vector.shape_cast %36 : vector<8xf32> to vector<8x1xf32>
    %cst_13 = arith.constant 0.000000e+00 : f32
    %38 = vector.broadcast %cst_13 : f32 to vector<8x256xf32>
    %39 = arith.select %16, %33, %38 : vector<8x256xi1>, vector<8x256xf32>
    %cst_14 = arith.constant dense<0.000000e+00> : vector<8xf32>
    %40 = vector.multi_reduction <add>, %39, %cst_14 [1] : vector<8x256xf32> to vector<8xf32>
    %41 = vector.shape_cast %40 : vector<8xf32> to vector<8x1xf32>
    %42 = vector.shape_cast %41 : vector<8x1xf32> to vector<8x1xf32>
    %43 = vector.broadcast %42 : vector<8x1xf32> to vector<8x256xf32>
    %44 = vector.shape_cast %37 : vector<8x1xf32> to vector<8x1xf32>
    %45 = vector.broadcast %44 : vector<8x1xf32> to vector<8x256xf32>
    %46 = arith.select %16, %43, %45 : vector<8x256xi1>, vector<8x256xf32>
    %cst_15 = arith.constant 7.812500e-03 : f32
    %47 = vector.broadcast %cst_15 : f32 to vector<8x256xf32>
    %48 = arith.mulf %46, %47 : vector<8x256xf32>
    %cst_16 = arith.constant 9.99999974E-6 : f32
    %49 = vector.broadcast %cst_16 : f32 to vector<8x256xf32>
    %50 = arith.addf %48, %49 : vector<8x256xf32>
    %51 = math.rsqrt %50 : vector<8x256xf32>
    %52 = arith.mulf %32, %51 : vector<8x256xf32>
    %53 = vector.broadcast %3 : vector<1x256xf32> to vector<8x256xf32>
    %54 = arith.mulf %52, %53 : vector<8x256xf32>
    %55 = vector.broadcast %4 : vector<1x256xf32> to vector<8x256xf32>
    %56 = arith.addf %54, %55 : vector<8x256xf32>
    %c0_17 = arith.constant 0 : index
    %c0_18 = arith.constant 0 : index
    %57 = vector.load %arg3[%c0_17, %c0_18] : memref<256x128xf32, #tpu.memory_space<vmem>>, vector<256x128xf32>
    %cst_19 = arith.constant dense<0.000000e+00> : vector<8x128xf32>
    %58 = tpu.matmul %56, %57, %cst_19 {dimension_numbers = #tpu.dot_dimension_numbers<[1], [0], [0], [1], [0, 0, 1, 1], [], []>} : vector<8x256xf32>, vector<256x128xf32>, vector<8x128xf32> -> vector<8x128xf32>
    %59 = vector.broadcast %5 : vector<1x128xf32> to vector<8x128xf32>
    %60 = arith.addf %58, %59 : vector<8x128xf32>
    %cst_20 = arith.constant 0.000000e+00 : f32
    %61 = vector.broadcast %cst_20 : f32 to vector<8x128xf32>
    %62 = arith.maximumf %60, %61 : vector<8x128xf32>
    %63 = tpu.iota {dimensions = array<i32: 1>} : vector<8x128xi32>
    %c64_i32 = arith.constant 64 : i32
    %64 = vector.broadcast %c64_i32 : i32 to vector<8x128xi32>
    %65 = arith.cmpi sge, %63, %64 : vector<8x128xi32>
    %cst_21 = arith.constant 0.000000e+00 : f32
    %66 = vector.broadcast %cst_21 : f32 to vector<8x128xf32>
    %67 = arith.select %65, %66, %62 : vector<8x128xi1>, vector<8x128xf32>
    %cst_22 = arith.constant dense<0.000000e+00> : vector<8xf32>
    %68 = vector.multi_reduction <add>, %67, %cst_22 [1] : vector<8x128xf32> to vector<8xf32>
    %69 = vector.shape_cast %68 : vector<8xf32> to vector<8x1xf32>
    %cst_23 = arith.constant 0.000000e+00 : f32
    %70 = vector.broadcast %cst_23 : f32 to vector<8x128xf32>
    %71 = arith.select %65, %62, %70 : vector<8x128xi1>, vector<8x128xf32>
    %cst_24 = arith.constant dense<0.000000e+00> : vector<8xf32>
    %72 = vector.multi_reduction <add>, %71, %cst_24 [1] : vector<8x128xf32> to vector<8xf32>
    %73 = vector.shape_cast %72 : vector<8xf32> to vector<8x1xf32>
    %74 = vector.shape_cast %73 : vector<8x1xf32> to vector<8x1xf32>
    %75 = vector.broadcast %74 : vector<8x1xf32> to vector<8x128xf32>
    %76 = vector.shape_cast %69 : vector<8x1xf32> to vector<8x1xf32>
    %77 = vector.broadcast %76 : vector<8x1xf32> to vector<8x128xf32>
    %78 = arith.select %65, %75, %77 : vector<8x128xi1>, vector<8x128xf32>
    %cst_25 = arith.constant 1.562500e-02 : f32
    %79 = vector.broadcast %cst_25 : f32 to vector<8x128xf32>
    %80 = arith.mulf %78, %79 : vector<8x128xf32>
    %81 = arith.subf %62, %80 : vector<8x128xf32>
    %82 = arith.mulf %81, %81 : vector<8x128xf32>
    %cst_26 = arith.constant 0.000000e+00 : f32
    %83 = vector.broadcast %cst_26 : f32 to vector<8x128xf32>
    %84 = arith.select %65, %83, %82 : vector<8x128xi1>, vector<8x128xf32>
    %cst_27 = arith.constant dense<0.000000e+00> : vector<8xf32>
    %85 = vector.multi_reduction <add>, %84, %cst_27 [1] : vector<8x128xf32> to vector<8xf32>
    %86 = vector.shape_cast %85 : vector<8xf32> to vector<8x1xf32>
    %cst_28 = arith.constant 0.000000e+00 : f32
    %87 = vector.broadcast %cst_28 : f32 to vector<8x128xf32>
    %88 = arith.select %65, %82, %87 : vector<8x128xi1>, vector<8x128xf32>
    %cst_29 = arith.constant dense<0.000000e+00> : vector<8xf32>
    %89 = vector.multi_reduction <add>, %88, %cst_29 [1] : vector<8x128xf32> to vector<8xf32>
    %90 = vector.shape_cast %89 : vector<8xf32> to vector<8x1xf32>
    %91 = vector.shape_cast %90 : vector<8x1xf32> to vector<8x1xf32>
    %92 = vector.broadcast %91 : vector<8x1xf32> to vector<8x128xf32>
    %93 = vector.shape_cast %86 : vector<8x1xf32> to vector<8x1xf32>
    %94 = vector.broadcast %93 : vector<8x1xf32> to vector<8x128xf32>
    %95 = arith.select %65, %92, %94 : vector<8x128xi1>, vector<8x128xf32>
    %cst_30 = arith.constant 1.562500e-02 : f32
    %96 = vector.broadcast %cst_30 : f32 to vector<8x128xf32>
    %97 = arith.mulf %95, %96 : vector<8x128xf32>
    %cst_31 = arith.constant 9.99999974E-6 : f32
    %98 = vector.broadcast %cst_31 : f32 to vector<8x128xf32>
    %99 = arith.addf %97, %98 : vector<8x128xf32>
    %100 = math.rsqrt %99 : vector<8x128xf32>
    %101 = arith.mulf %81, %100 : vector<8x128xf32>
    %102 = vector.broadcast %6 : vector<1x128xf32> to vector<8x128xf32>
    %103 = arith.mulf %101, %102 : vector<8x128xf32>
    %104 = vector.broadcast %7 : vector<1x128xf32> to vector<8x128xf32>
    %105 = arith.addf %103, %104 : vector<8x128xf32>
    %c0_32 = arith.constant 0 : index
    %c0_33 = arith.constant 0 : index
    %106 = vector.load %arg4[%c0_32, %c0_33] : memref<8x128xf32, #tpu.memory_space<vmem>>, vector<8x128xf32>
    %cst_34 = arith.constant dense<0.000000e+00> : vector<8x8xf32>
    %107 = tpu.matmul %106, %105, %cst_34 {dimension_numbers = #tpu.dot_dimension_numbers<[1], [1], [0], [0], [0, 0, 1, 0], [], []>} : vector<8x128xf32>, vector<8x128xf32>, vector<8x8xf32> -> vector<8x8xf32>
    %c0_35 = arith.constant 0 : index
    %c0_36 = arith.constant 0 : index
    %108 = vector.load %arg6[%c0_35, %c0_36] : memref<8x1xf32, #tpu.memory_space<vmem>>, vector<8x1xf32>
    %109 = vector.broadcast %108 : vector<8x1xf32> to vector<8x8xf32>
    %110 = arith.addf %107, %109 : vector<8x8xf32>
    %c0_37 = arith.constant 0 : index
    %c0_38 = arith.constant 0 : index
    %111 = vector.load %arg7[%c0_37, %c0_38] : memref<8x8xf32, #tpu.memory_space<vmem>>, vector<8x8xf32>
    tpu.vector_store %arg7[%c0_37, %c0_38], %110 {strides = array<i32>} : memref<8x8xf32, #tpu.memory_space<vmem>>, vector<8x8xf32>,
    return
  }
  func.func @transform_0(%arg0: i32) -> (i32, i32) {
    %c0_i32 = arith.constant 0 : i32
    %c0_i32_0 = arith.constant 0 : i32
    return %arg0, %c0_i32 : i32, i32
  }
  func.func @transform_1(%arg0: i32) -> (i32, i32) {
    %c0_i32 = arith.constant 0 : i32
    %c0_i32_0 = arith.constant 0 : i32
    %c0_i32_1 = arith.constant 0 : i32
    return %c0_i32, %c0_i32_0 : i32, i32
  }
  func.func @transform_2(%arg0: i32) -> (i32, i32) {
    %c0_i32 = arith.constant 0 : i32
    %c0_i32_0 = arith.constant 0 : i32
    %c0_i32_1 = arith.constant 0 : i32
    return %c0_i32, %c0_i32_0 : i32, i32
  }
  func.func @transform_3(%arg0: i32) -> (i32, i32) {
    %c0_i32 = arith.constant 0 : i32
    %c0_i32_0 = arith.constant 0 : i32
    %c0_i32_1 = arith.constant 0 : i32
    return %c0_i32, %c0_i32_0 : i32, i32
  }
  func.func @transform_4(%arg0: i32) -> (i32, i32) {
    %c0_i32 = arith.constant 0 : i32
    %c0_i32_0 = arith.constant 0 : i32
    %c0_i32_1 = arith.constant 0 : i32
    return %c0_i32, %c0_i32_0 : i32, i32
  }
  func.func @transform_5(%arg0: i32) -> (i32, i32) {
    %c0_i32 = arith.constant 0 : i32
    %c0_i32_0 = arith.constant 0 : i32
    %c0_i32_1 = arith.constant 0 : i32
    return %c0_i32, %c0_i32_0 : i32, i32
  }
  func.func @transform_6(%arg0: i32) -> (i32, i32) {
    %c0_i32 = arith.constant 0 : i32
    %c0_i32_0 = arith.constant 0 : i32
    return %c0_i32, %arg0 : i32, i32
  }
}

</mosaic_0001>

<bundles_post_ra>
// kernel: tpu_custom_call.1
= control target key start
LH: loop header
LB: loop body
LE: loop exit
PB: predicated region body
PF: predicated region fallthrough
CT: control target
= control target key end

     0   :  { %11 = vsyncpa [#allocation3], 0  ;;  %s611_s0 = inlined_call_operand.vmem [shape: f32[8,32], index: 0, kind: input, shape index: {}]   ;;  %s612_s1 = inlined_call_operand.hbm [shape: f32[32,256], index: 1, kind: input, shape index: {}]   ;;  %s613_s2 = inlined_call_operand.hbm [shape: f32[256,128], index: 2, kind: input, shape index: {}]   ;;  %s614_s3 = inlined_call_operand.hbm [shape: f32[8,128], index: 3, kind: input, shape index: {}]   ;;  %s615_s4 = inlined_call_operand.hbm [shape: f32[8,256], index: 4, kind: input, shape index: {}]   ;;  %s616_s5 = inlined_call_operand.vmem [shape: f32[8,1], index: 5, kind: input, shape index: {}]   ;;  %s617_s6 = inlined_call_operand.hbm [shape: f32[8,8], index: 6, kind: output, shape index: {}]  }
   0x1   :  { %12 = vsyncpa [#allocation6], 0 }
   0x2   :  { %13 = vsyncpa [#allocation9], 0  ;;  %s34_s23 = sshll.u32 %s613_s2, 4  ;;  %s35_s23 = int_to_ptr.hbm [resolvable:$true] %s34_s23 }
   0x3   :  { %14 = vsyncpa [#allocation4], 0  ;;  %s516_s24 = smov [#allocation5]   ;;  %s21_s28 = sshll.u32 %s612_s1, 4  ;;  %s22_s28 = int_to_ptr.hbm [resolvable:$true] %s21_s28 }
   0x4   :  { %s36_s25 = sshll.u32 %s516_s24, 4  ;;  %s517_s29 = smov 128   ;;  %s37_s25 = int_to_ptr.vmem [resolvable:$true] %s36_s25 }
   0x5   :  { %s518_s30 = smov 8   ;;  %s519_s7 = smov [#allocation2]  }
   0x6   :  { %42 = dma.hbm_to_vmem [thread:$0]  %s35_s23, 4096, %s37_s25, [#allocation6], %s517_s29, %s517_s29, %s518_s30  }
   0x7   :  { %s23_s8 = sshll.u32 %s519_s7, 4  ;;  %s520_s9 = smov 256   ;;  %s24_s8 = int_to_ptr.vmem [resolvable:$true] %s23_s8 }
   0x8   :  { %s521_s10 = smov 16   ;;  %s48_s12 = sshll.u32 %s614_s3, 4  ;;  %s49_s12 = int_to_ptr.hbm [resolvable:$true] %s48_s12 }
   0x9   :  { %29 = dma.hbm_to_vmem [thread:$0]  %s22_s28, 1024, %s24_s8, [#allocation3], %s520_s9, %s520_s9, %s521_s10  }
   0xa   :  { %s522_s13 = smov [#allocation7]   ;;  %s59_s16 = sshll.u32 %s615_s4, 4  ;;  %s60_s16 = int_to_ptr.hbm [resolvable:$true] %s59_s16 }
   0xb   :  { %s50_s14 = sshll.u32 %s522_s13, 4  ;;  %s523_s17 = smov [#allocation8]   ;;  %s51_s14 = int_to_ptr.vmem [resolvable:$true] %s50_s14 }
   0xc   :  { %53 = dma.hbm_to_vmem [thread:$0]  %s49_s12, 128, %s51_s14, [#allocation6]  }
   0xd   :  { %s61_s18 = sshll.u32 %s523_s17, 4  ;;  %s62_s18 = int_to_ptr.vmem [resolvable:$true] %s61_s18 }
   0xe   :  { %64 = dma.hbm_to_vmem [thread:$0]  %s60_s16, 256, %s62_s18, [#allocation9]  }
   0xf   :  { %508 = dma.done.wait [#allocation3], 1024  }
  0x10   :  { %509 = vsyncadd [#allocation3], 4294966272 }
  0x11   :  { %510 = dma.done.wait [#allocation6], 4224  }
  0x12   :  { %511 = vsyncadd [#allocation6], 4294963072 }
  0x13   :  { %512 = dma.done.wait [#allocation9], 256  }
  0x14   :  { %513 = vsyncadd [#allocation9], 4294967040  ;;  %v92_v0 = vld [vmem:[#allocation2 + $0x30] sm:$0xff]  ;;  %v90_v1 = vld [vmem:[#allocation2 + $0x20] sm:$0xff]  ;;  %vm96_vm0 = vcmask 261120   ;;  %s356_s23 = sshll.u32 %s617_s6, 4  ;;  %s357_s23 = int_to_ptr.hbm [resolvable:$true] %s356_s23 }
  0x15   :  { %112 = vmatpush.msra.mxu0 %v92_v0  ;;  %v93_v2 = vld [vmem:[#allocation2 + $0x38] sm:$0xff]  ;;  %v88_v3 = vld [vmem:[#allocation2 + $0x10] sm:$0xff]  ;;  %v91_v4 = vld [vmem:[#allocation2 + $0x28] sm:$0xff]  ;;  %vm347_vm11 = vcmask 64512  }
  0x16   :  { %132 = vmatpush.msra.mxu1 %v93_v2  ;;  %v89_v5 = vld [vmem:[#allocation2 + $0x18] sm:$0xff]  ;;  %v86_v6 = vld [vmem:[#allocation2] sm:$0xff]  ;;  %v87_v8 = vld [vmem:[#allocation2 + $0x8] sm:$0xff] }
  0x17   :  { %113 = vmatpush.msra.mxu0 %v90_v1  ;;  %v83_v7 = vld [vmem:[%s611_s0] sm:$0xff]  ;;  %v576_v9 = vld [vmem:[#allocation8] sm:$0xff]  ;;  %v579_v11 = vld [vmem:[#allocation8 + $0x8] sm:$0xff] }
  0x18   :  { %133 = vmatpush.msra.mxu1 %v91_v4  ;;  %v94_v10 = vperm.slane %v576_v9, 0  ;;  %v95_v14 = vperm.slane %v579_v11, 0  ;;  %v226_v19 = vld [vmem:[#allocation5 + $0x78] sm:$0xff]  ;;  %v225_v20 = vld [vmem:[#allocation5 + $0x70] sm:$0xff]  ;;  %v224_v29 = vld [vmem:[#allocation5 + $0x68] sm:$0xff] }
  0x19   :  { %114 = vmatpush.msra.mxu0 %v88_v3  ;;  %244 = vmatpush.msra.mxu2 %v226_v19  ;;  %v223_v30 = vld [vmem:[#allocation5 + $0x60] sm:$0xff]  ;;  %v222_v31 = vld [vmem:[#allocation5 + $0x58] sm:$0xff]  ;;  %v221_v33 = vld [vmem:[#allocation5 + $0x50] sm:$0xff] }
  0x1a   :  { %134 = vmatpush.msra.mxu1 %v89_v5  ;;  %v242_v32 = vld [vmem:[#allocation5 + $0xf8] sm:$0xff]  ;;  %v241_v34 = vld [vmem:[#allocation5 + $0xf0] sm:$0xff]  ;;  %v220_v35 = vld [vmem:[#allocation5 + $0x48] sm:$0xff] }
  0x1b   :  { %115 = vmatpush.msra.mxu0 %v86_v6  ;;  %245 = vmatpush.msra.mxu2 %v225_v20  ;;  %v240_v36 = vld [vmem:[#allocation5 + $0xe8] sm:$0xff]  ;;  %v219_v37 = vld [vmem:[#allocation5 + $0x40] sm:$0xff]  ;;  %v218_v39 = vld [vmem:[#allocation5 + $0x38] sm:$0xff] }
  0x1c   :  { %368 = vmatmul.msk.f32.vlgmr.msra.gmra.mxu0 %vm96_vm0, %v83_v7  ;;  %135 = vmatpush.msra.mxu1 %v87_v8  ;;  %v239_v38 = vld [vmem:[#allocation5 + $0xe0] sm:$0xff]  ;;  %v238_v40 = vld [vmem:[#allocation5 + $0xd8] sm:$0xff]  ;;  %v217_v41 = vld [vmem:[#allocation5 + $0x30] sm:$0xff] }
  0x1d   :  { %369 = vmatmul.msk.f32.vlgmr.msra.gmra.mxu1 %vm96_vm0, %v83_v7  ;;  %246 = vmatpush.msra.mxu2 %v224_v29  ;;  %v237_v42 = vld [vmem:[#allocation5 + $0xd0] sm:$0xff]  ;;  %v216_v43 = vld [vmem:[#allocation5 + $0x28] sm:$0xff]  ;;  %v215_v45 = vld [vmem:[#allocation5 + $0x20] sm:$0xff]  ;;  %v243_v29 = vperm.slane %v576_v9, 3 }
  0x1e   :  { %264 = vmatpush.msra.mxu3 %v242_v32  ;;  %v236_v44 = vld [vmem:[#allocation5 + $0xc8] sm:$0xff]  ;;  %v235_v46 = vld [vmem:[#allocation5 + $0xc0] sm:$0xff]  ;;  %v214_v47 = vld [vmem:[#allocation5 + $0x18] sm:$0xff] }
  0x1f   :  { %247 = vmatpush.msra.mxu2 %v223_v30  ;;  %v234_v48 = vld [vmem:[#allocation5 + $0xb8] sm:$0xff]  ;;  %v213_v49 = vld [vmem:[#allocation5 + $0x10] sm:$0xff]  ;;  %v212_v51 = vld [vmem:[#allocation5 + $0x8] sm:$0xff] }
  0x20   :  { %265 = vmatpush.msra.mxu3 %v241_v34  ;;  %v233_v50 = vld [vmem:[#allocation5 + $0xb0] sm:$0xff]  ;;  %v232_v52 = vld [vmem:[#allocation5 + $0xa8] sm:$0xff]  ;;  %v211_v53 = vld [vmem:[#allocation5] sm:$0xff] }
  0x21   :  { %248 = vmatpush.msra.mxu2 %v222_v31  ;;  %v231_v54 = vld [vmem:[#allocation5 + $0xa0] sm:$0xff]  ;;  %v230_v55 = vld [vmem:[#allocation5 + $0x98] sm:$0xff]  ;;  %v229_v56 = vld [vmem:[#allocation5 + $0x90] sm:$0xff] }
  0x22   :  { %266 = vmatpush.msra.mxu3 %v240_v36  ;;  %v228_v57 = vld [vmem:[#allocation5 + $0x88] sm:$0xff]  ;;  %v227_v60 = vld [vmem:[#allocation5 + $0x80] sm:$0xff] }
  0x23   :  { %249 = vmatpush.msra.mxu2 %v221_v33 }
  0x24   :  { %267 = vmatpush.msra.mxu3 %v239_v38 }
  0x25   :  { %250 = vmatpush.msra.mxu2 %v220_v35 }
  0x26   :  { %268 = vmatpush.msra.mxu3 %v238_v40 }
  0x27   :  { %251 = vmatpush.msra.mxu2 %v219_v37 }
  0x28   :  { %269 = vmatpush.msra.mxu3 %v237_v42 }
  0x29   :  { %252 = vmatpush.msra.mxu2 %v218_v39 }
  0x2a   :  { %270 = vmatpush.msra.mxu3 %v236_v44 }
  0x2b   :  { %253 = vmatpush.msra.mxu2 %v217_v41 }
  0x2c   :  { %271 = vmatpush.msra.mxu3 %v235_v46 }
  0x2d   :  { %254 = vmatpush.msra.mxu2 %v216_v43 }
  0x2e   :  { %272 = vmatpush.msra.mxu3 %v234_v48 }
  0x2f   :  { %255 = vmatpush.msra.mxu2 %v215_v45 }
  0x30   :  { %273 = vmatpush.msra.mxu3 %v233_v50 }
  0x31   :  { %256 = vmatpush.msra.mxu2 %v214_v47  ;;  %v321_v47 = vld [vmem:[%s616_s5] sm:$0xff]  ;;  %s525_s5 = smov [#allocation10]  }
  0x32   :  { %274 = vmatpush.msra.mxu3 %v232_v52  ;;  %s354_s20 = sshll.u32 %s525_s5, 4  ;;  %s355_s20 = int_to_ptr.vmem [resolvable:$true] %s354_s20 }
  0x33   :  { %257 = vmatpush.msra.mxu2 %v213_v49  ;;  %v524_v49 = vmov 0  }
  0x34   :  { %275 = vmatpush.msra.mxu3 %v231_v54  ;;  %380 = vset.pattern.permute.xlu2 %v524_v49 }
  0x35   :  { %258 = vmatpush.msra.mxu2 %v212_v51  ;;  %381 = vset.pattern.permute.xlu0 %v524_v49 }
  0x36   :  { %276 = vmatpush.msra.mxu3 %v230_v55 }
  0x37   :  { %259 = vmatpush.msra.mxu2 %v211_v53 }
  0x38   :  { %277 = vmatpush.msra.mxu3 %v229_v56 }
  0x3a   :  { %278 = vmatpush.msra.mxu3 %v228_v57  ;;  %v316_v57 = vperm.slane %v576_v9, 4 }
  0x3c   :  { %279 = vmatpush.msra.mxu3 %v227_v60  ;;  %v318_v60 = vperm.slane %v576_v9, 5 }
  0x99   :  { %v117_v12 = vpop.f32.mrf.mxu0 }
  0x9a   :  { %v118_v13 = vadd.f32 %v117_v12, %v94_v10  ;;  %v137_v15 = vpop.f32.mrf.mxu1  ;;  %v203_v10 = vperm.slane %v576_v9, 1 }
  0x9b   :  { %v138_v17 = vadd.f32 %v137_v15, %v95_v14  ;;  %v207_v15 = vperm.slane %v576_v9, 2 }
  0x9c   :  { %v140_v16 = vmax.f32 %v118_v13, 0.0 }
  0x9d   :  { %v141_v18 = vmax.f32 %v138_v17, 0.0 }
  0x9e   :  { %150 = vadd.xlane.f32.xlu0 %v140_v16 }
  0xa6   :  { %155 = vadd.xlane.f32.xlu0 %v141_v18 }
 0x111   :  { %v151_v21 = vpop.xlane.xlu0 %150 }
 0x112   :  { %v159_v22 = vmul.f32 0.0078125, %v151_v21  ;;  %v204_v21 = vperm.slane %v579_v11, 1 }
 0x114   :  { %v582_v23 = vsub.f32 %v140_v16, %v159_v22 }
 0x116   :  { %v163_v24 = vmul.f32 %v582_v23, %v582_v23 }
 0x118   :  { %168 = vadd.xlane.f32.xlu1 %v163_v24 }
 0x119   :  { %v156_v25 = vpop.xlane.xlu0 %155 }
 0x11a   :  { %v160_v26 = vmul.f32 0.0078125, %v156_v25  ;;  %v208_v25 = vperm.slane %v579_v11, 2 }
 0x11c   :  { %v586_v27 = vsub.f32 %v141_v18, %v160_v26 }
 0x11e   :  { %v164_v28 = vmul.f32 %v586_v27, %v586_v27 }
 0x120   :  { %173 = vadd.xlane.f32.xlu1 %v164_v28  ;;  %v142_v28 = vlaneseq }
 0x122   :  { %v143_v31 = vand.u32 127, %v142_v28 }
 0x124   :  { %vm285_vm7 = vcmp.ge.s32.totalorder %v143_v31, 64 }
 0x18b   :  { %v169_v58 = vpop.xlane.xlu1 %168 }
 0x18c   :  { %v177_v59 = vmul.f32 0.0078125, %v169_v58 }
 0x18e   :  { %v179_v61 = vadd.f32 1e-05, %v177_v59 }
 0x190   :  { %382 = vrsqrt.f32 %v179_v61  ;;  %vm187_vm2 = vweird.f32 %v179_v61 }
 0x193   :  { %v174_v62 = vpop.xlane.xlu1 %173 }
 0x194   :  { %v178_v63 = vmul.f32 0.0078125, %v174_v62 }
 0x196   :  { %v383_v0 = vpop.eup %382  ;;  %v180_v1 = vadd.f32 1e-05, %v178_v63  ;;  %v320_v63 = vld [vmem:[#allocation7] sm:$0xff] }
 0x197   :  { %v182_v2 = vmul.f32 %v383_v0, %v179_v61  ;;  %vm188_vm1 = vweird.f32 %v383_v0 }
 0x198   :  { %384 = vrsqrt.f32 %v180_v1  ;;  %vm189_vm3 = vmor %vm187_vm2, %vm188_vm1  ;;  %vm197_vm5 = vweird.f32 %v180_v1 }
 0x199   :  { %v183_v3 = vmul.f32 %v383_v0, %v182_v2 }
 0x19b   :  { %v184_v4 = vmul.f32 0.5, %v183_v3 }
 0x19d   :  { %v185_v5 = vsub.f32 1.5, %v184_v4 }
 0x19e   :  { %v385_v6 = vpop.eup %384 }
 0x19f   :  { %v186_v7 = vmul.f32 %v383_v0, %v185_v5  ;;  %v192_v8 = vmul.f32 %v385_v6, %v180_v1  ;;  %vm198_vm4 = vweird.f32 %v385_v6 }
 0x1a0   :  { %vm199_vm6 = vmor %vm197_vm5, %vm198_vm4 }
 0x1a1   :  { %v193_v12 = vmul.f32 %v385_v6, %v192_v8  ;;  %v190_v13 = vsel %vm189_vm3, %v383_v0, %v186_v7 }
 0x1a2   :  { %v201_v14 = vmul.f32 %v190_v13, %v582_v23 }
 0x1a3   :  { %v194_v16 = vmul.f32 0.5, %v193_v12 }
 0x1a4   :  { %v205_v17 = vmul.f32 %v203_v10, %v201_v14 }
 0x1a5   :  { %v195_v18 = vsub.f32 1.5, %v194_v16 }
 0x1a6   :  { %v209_v19 = vadd.f32 %v207_v15, %v205_v17 }
 0x1a7   :  { %v196_v20 = vmul.f32 %v385_v6, %v195_v18 }
 0x1a8   :  { %260 = vmatmul.f32.vlgmr.msra.gmra.mxu2 %v209_v19 }
 0x1a9   :  { %v200_v22 = vsel %vm199_vm6, %v385_v6, %v196_v20 }
 0x1aa   :  { %v202_v24 = vmul.f32 %v200_v22, %v586_v27 }
 0x1ac   :  { %v206_v26 = vmul.f32 %v204_v21, %v202_v24 }
 0x1ae   :  { %v210_v23 = vadd.f32 %v208_v25, %v206_v26 }
 0x1b0   :  { %280 = vmatmul.f32.vlgmr.msra.gmra.mxu3 %v210_v23 }
 0x22b   :  { %v261_v30 = vpop.f32.mrf.mxu2 }
 0x22c   :  { %v262_v32 = vadd.f32 %v261_v30, %v243_v29 }
 0x233   :  { %v281_v33 = vpop.f32.mrf.mxu3 }
 0x234   :  { %v282_v34 = vadd.f32 %v281_v33, %v262_v32 }
 0x236   :  { %v284_v35 = vmax.f32 %v282_v34, 0.0 }
 0x238   :  { %v286_v36 = vsel %vm285_vm7, 0.0, %v284_v35  ;;  %v289_v27 = vsel %vm285_vm7, %v284_v35, 0.0 }
 0x239   :  { %287 = vadd.xlane.f32.xlu2 %v286_v36 }
 0x241   :  { %290 = vadd.xlane.f32.xlu2 %v289_v27 }
 0x259   :  { %324 = vperm.xlu2 %380, %v321_v47  }
 0x2ac   :  { %v288_v11 = vpop.xlane.xlu2 %287 }
 0x2b4   :  { %v291_v37 = vpop.xlane.xlu2 %290 }
 0x2b5   :  { %v292_v38 = vsel %vm285_vm7, %v291_v37, %v288_v11 }
 0x2b6   :  { %v293_v39 = vmul.f32 0.015625, %v292_v38 }
 0x2b8   :  { %v294_v40 = vsub.f32 %v284_v35, %v293_v39 }
 0x2ba   :  { %v295_v41 = vmul.f32 %v294_v40, %v294_v40 }
 0x2bc   :  { %v299_v42 = vsel %vm285_vm7, %v295_v41, 0.0  ;;  %v296_v43 = vsel %vm285_vm7, 0.0, %v295_v41  ;;  %v325_v0 = vpop.permute.xlu2 %324 }
 0x2bd   :  { %300 = vadd.xlane.f32.xlu1 %v299_v42  ;;  %297 = vadd.xlane.f32.xlu0 %v296_v43 }
 0x330   :  { %v301_v44 = vpop.xlane.xlu1 %300  ;;  %v298_v45 = vpop.xlane.xlu0 %297 }
 0x331   :  { %v302_v46 = vsel %vm285_vm7, %v301_v44, %v298_v45 }
 0x332   :  { %v303_v48 = vmul.f32 0.015625, %v302_v46 }
 0x334   :  { %v304_v50 = vadd.f32 1e-05, %v303_v48 }
 0x336   :  { %386 = vrsqrt.f32 %v304_v50  ;;  %vm311_vm9 = vweird.f32 %v304_v50 }
 0x33c   :  { %v387_v51 = vpop.eup %386 }
 0x33d   :  { %v306_v52 = vmul.f32 %v387_v51, %v304_v50  ;;  %vm312_vm8 = vweird.f32 %v387_v51 }
 0x33e   :  { %vm313_vm10 = vmor %vm311_vm9, %vm312_vm8 }
 0x33f   :  { %v307_v53 = vmul.f32 %v387_v51, %v306_v52 }
 0x341   :  { %v308_v54 = vmul.f32 0.5, %v307_v53 }
 0x343   :  { %v309_v55 = vsub.f32 1.5, %v308_v54 }
 0x345   :  { %v310_v56 = vmul.f32 %v387_v51, %v309_v55 }
 0x347   :  { %v314_v58 = vsel %vm313_vm10, %v387_v51, %v310_v56 }
 0x348   :  { %v315_v59 = vmul.f32 %v314_v58, %v294_v40 }
 0x34a   :  { %v317_v61 = vmul.f32 %v316_v57, %v315_v59 }
 0x34c   :  { %v319_v62 = vadd.f32 %v318_v60, %v317_v61 }
 0x34e   :  { %342 = vmatpush.xpose.msrb.mxu0 %v319_v62 }
 0x351   :  { %343 = vmatmul.f32.vlgmr.msrb.gmra.mxu0 %v320_v63 }
 0x3ce   :  { %v344_v1 = vpop.f32.mrf.mxu0 }
 0x3cf   :  { %v345_v2 = vadd.f32 %v344_v1, %v325_v0 }
 0x3d1   :  { %348 = vst.msk [vmem:[#allocation10] sm:$0xff] %vm347_vm11, %v345_v2 }
 0x3d2   :  { %359 = dma.vmem_to_hbm [thread:$0]  %s355_s20, 128, %s357_s23, [#allocation4]  }
 0x3d3   :  { %514 = dma.done.wait [#allocation4], 128  }
 0x3d4   :  { %515 = vsyncadd [#allocation4], 4294967168 }
 0x3d5   :  { %364 = vsyncpa [#allocation3], 1 }
 0x3d6   :  { %365 = vsyncpa [#allocation6], 1 }
 0x3d7   :  { %366 = vsyncpa [#allocation9], 1 }
 0x3d8   :  { %367 = vsyncpa [#allocation4], 1 }

</bundles_post_ra>
